<compile_context>
chip_gen: v7x
topology: tpu7x:2x2x1
jax: 0.10.0
libtpu: 0.0.40
codegen_flags: <defaults>
</compile_context>

<pallas_src>
import jax
import jax.numpy as jnp
import numpy as np
from jax.experimental import pallas as pl
from jax.experimental.pallas import tpu as pltpu

N_QUBITS = 40
N_CLASSES = 3

# Hillis-Steele scan layout: rows [0, PAD) of the scratch hold the
# multiplicative identity so that shifted reads never index out of range.
_SCAN_PAD = 32
_SCAN_ROWS = _SCAN_PAD + N_QUBITS            # 72 (multiple of 8)
_SCAN_SHIFTS = (1, 2, 4, 8, 16, 32)          # 1+2+...+32 = 63 >= N_QUBITS - 1


def qnn_kernel(xT_ref, w0_ref, cw1_ref, fcw_ref, fcb_ref, out_ref, s_ref):
    N, TB = xT_ref.shape                                   # (40, TB)

    # Per-qubit <Z> of the product state before the CNOT ring.
    z = jnp.cos(xT_ref[...] + w0_ref[...]) * cw1_ref[...]  # (N, TB)

    # --- prefix products via a log2-step scan on a padded VMEM scratch ---
    # scratch rows [0, PAD) = 1.0 (identity), row PAD = 1.0 (z_0 slot folded
    # in via `where`, so the scan yields s[i] = prod_{j=1..i} z_j), and rows
    # (PAD, PAD+N) = z_1 .. z_39.  All stores are sublane-aligned.
    row = jax.lax.broadcasted_iota(jnp.int32, (N, 1), 0)
    s_ref[_SCAN_PAD:, :] = jnp.where(row == 0, 1.0, z)                # aligned
    s_ref[0:_SCAN_PAD, :] = jnp.ones((_SCAN_PAD, TB), jnp.float32)    # aligned
    for k in _SCAN_SHIFTS:   # 6 static steps instead of a 40-step unroll
        s_ref[_SCAN_PAD:, :] = (
            s_ref[_SCAN_PAD:, :] * s_ref[_SCAN_PAD - k:_SCAN_ROWS - k, :])
    s = s_ref[_SCAN_PAD:, :]            # (N, TB): s[i] = prod_{j=1..i} z_j

    # wire i>=1: prod_{0..i} = z_0 * s[i];   wire 0: prod_{1..N-1} = s[N-1]
    q = jnp.where(row == 0, s[N - 1:N, :], z[0:1, :] * s)   # (N, TB)

    # Linear(N, 3) on the MXU; classes on sublanes, batch stays lane-dense.
    y = jnp.dot(fcw_ref[...], q, preferred_element_type=jnp.float32)
    y = y + fcb_ref[...]                                    # (3, TB)

    # log_softmax over the 3 classes: explicit rows -> pure elementwise work.
    y0, y1, y2 = y[0:1, :], y[1:2, :], y[2:3, :]
    m = jnp.maximum(jnp.maximum(y0, y1), y2)
    lse = m + jnp.log(jnp.exp(y0 - m) + jnp.exp(y1 - m) + jnp.exp(y2 - m))
    out_ref[...] = y - lse


def _batch_tiling(B, tb):
    """Choose (tile, padded_batch, n_blocks) minimizing padding waste."""
    tb_cap = max(128, (tb // 128) * 128)
    n_blocks = pl.cdiv(B, tb_cap)
    if n_blocks == 1 and B >= 1024:
        n_blocks = 2              # give v7x megacore two parallel grid steps
    if n_blocks == 1:
        return B, B, 1            # single full-array block, zero padding
    TB = pl.cdiv(pl.cdiv(B, n_blocks), 128) * 128
    return TB, n_blocks * TB, n_blocks


def qnn_forward(x, weights, fc_w, fc_b, *, tb=4096):
    """x: (B, N) f32, weights: (N, 3), fc_w: (3, N), fc_b: (3,) -> (B, 3)."""
    B, N = x.shape
    assert N == N_QUBITS

    # Trimmed / hoisted constants (the RZ row of `weights` commutes with Z and
    # is dropped; cos of the RY row is precomputed once).
    w0 = weights[:, 0].reshape(N, 1)
    cw1 = jnp.cos(weights[:, 1]).reshape(N, 1)
    fcb = fc_b.reshape(N_CLASSES, 1)

    # Lane-dense layout: batch on the 128-lane axis (transpose is layout
    # plumbing in the wrapper).
    # TODO(synk): fold this transpose into the kernel (XLU transpose of the
    # natural (TB, 40) tile) once Mosaic 2-D transpose of that shape is
    # verified on the target toolchain; it would save one HBM round trip of x.
    TB, Bpad, n_blocks = _batch_tiling(B, tb)
    xT = jnp.transpose(x)                                   # (N, B)
    if Bpad != B:
        xT = jnp.pad(xT, ((0, 0), (0, Bpad - B)))

    outT = pl.pallas_call(
        qnn_kernel,
        out_shape=jax.ShapeDtypeStruct((N_CLASSES, Bpad), jnp.float32),
        grid=(n_blocks,),
        in_specs=[
            pl.BlockSpec((N, TB), lambda i: (0, i)),           # x^T tile
            pl.BlockSpec((N, 1), lambda i: (0, 0)),            # RX angles
            pl.BlockSpec((N, 1), lambda i: (0, 0)),            # cos(RY angles)
            pl.BlockSpec((N_CLASSES, N), lambda i: (0, 0)),    # fc weight
            pl.BlockSpec((N_CLASSES, 1), lambda i: (0, 0)),    # fc bias
        ],
        out_specs=pl.BlockSpec((N_CLASSES, TB), lambda i: (0, i)),
        scratch_shapes=[pltpu.VMEM((_SCAN_ROWS, TB), jnp.float32)],
        compiler_params=pltpu.CompilerParams(
            dimension_semantics=("parallel",)),
    )(xT, w0, cw1, fc_w, fcb)

    return jnp.transpose(outT)[:B, :]


def qnn_reference(x, weights, fc_w, fc_b):
    """Pure-JAX reference of the same closed-form forward pass."""
    z = jnp.cos(x + weights[:, 0][None, :]) * jnp.cos(weights[:, 1][None, :])
    cp = jnp.cumprod(z, axis=1)
    q0 = jnp.prod(z[:, 1:], axis=1, keepdims=True)
    q = jnp.concatenate([q0, cp[:, 1:]], axis=1)
    y = jnp.dot(q, fc_w.T, precision=jax.lax.Precision.HIGHEST) + fc_b[None, :]
    return jax.nn.log_softmax(y, axis=1)


if __name__ == "__main__":
    key = jax.random.PRNGKey(0)
    k_x, k_w, k_fw, k_fb = jax.random.split(key, 4)

    batch = 2
    x = jax.random.uniform(k_x, (batch, N_QUBITS), jnp.float32,
                           minval=-jnp.pi, maxval=jnp.pi)
    weights = jax.random.uniform(k_w, (N_QUBITS, 3), jnp.float32,
                                 minval=0.0, maxval=2.0 * jnp.pi)
    bound = 1.0 / np.sqrt(N_QUBITS)
    fc_w = jax.random.uniform(k_fw, (N_CLASSES, N_QUBITS), jnp.float32,
                              minval=-bound, maxval=bound)
    fc_b = jax.random.uniform(k_fb, (N_CLASSES,), jnp.float32,
                              minval=-bound, maxval=bound)

    out = jax.block_until_ready(qnn_forward(x, weights, fc_w, fc_b))
    ref = jax.block_until_ready(qnn_reference(x, weights, fc_w, fc_b))
    np.testing.assert_allclose(np.asarray(out), np.asarray(ref),
                               rtol=1e-5, atol=1e-5)

    # Also exercise the tiled / padded multi-block grid path at a small size.
    x2 = jax.random.uniform(jax.random.PRNGKey(1), (300, N_QUBITS),
                            jnp.float32, minval=-jnp.pi, maxval=jnp.pi)
    out2 = jax.block_until_ready(qnn_forward(x2, weights, fc_w, fc_b, tb=128))
    ref2 = jax.block_until_ready(qnn_reference(x2, weights, fc_w, fc_b))
    np.testing.assert_allclose(np.asarray(out2), np.asarray(ref2),
                               rtol=1e-5, atol=1e-5)

    print("KERNEL_OK")
</pallas_src>

<mosaic_0001>
module attributes {stable_mosaic.version = 11 : i64} {
  func.func @qnn_kernel(%arg0: i32, %arg1: memref<40x2xf32, #tpu.memory_space<vmem>>, %arg2: memref<40x1xf32, #tpu.memory_space<vmem>>, %arg3: memref<40x1xf32, #tpu.memory_space<vmem>>, %arg4: memref<3x40xf32, #tpu.memory_space<vmem>>, %arg5: memref<3x1xf32, #tpu.memory_space<vmem>>, %arg6: memref<3x2xf32, #tpu.memory_space<vmem>>, %arg7: memref<72x2xf32, #tpu.memory_space<vmem>>) attributes {dimension_semantics = [#tpu.dimension_semantics<parallel>], iteration_bounds = array<i64: 1>, scalar_prefetch = 0 : i64, scratch_operands = 1 : i64, tpu.core_type = #tpu.core_type<tc>, window_params = [{transform_indices = @transform_0, window_bounds = array<i64: 40, 2>}, {pipeline_mode = #tpu.pipeline_mode<synchronous>, transform_indices = @transform_1, window_bounds = array<i64: 40, 1>}, {pipeline_mode = #tpu.pipeline_mode<synchronous>, transform_indices = @transform_2, window_bounds = array<i64: 40, 1>}, {pipeline_mode = #tpu.pipeline_mode<synchronous>, transform_indices = @transform_3, window_bounds = array<i64: 3, 40>}, {pipeline_mode = #tpu.pipeline_mode<synchronous>, transform_indices = @transform_4, window_bounds = array<i64: 3, 1>}, {transform_indices = @transform_5, window_bounds = array<i64: 3, 2>}]} {
    %c0 = arith.constant 0 : index
    %c0_0 = arith.constant 0 : index
    %0 = vector.load %arg1[%c0, %c0_0] : memref<40x2xf32, #tpu.memory_space<vmem>>, vector<40x2xf32>
    %c0_1 = arith.constant 0 : index
    %c0_2 = arith.constant 0 : index
    %1 = vector.load %arg2[%c0_1, %c0_2] : memref<40x1xf32, #tpu.memory_space<vmem>>, vector<40x1xf32>
    %2 = vector.broadcast %1 : vector<40x1xf32> to vector<40x2xf32>
    %3 = arith.addf %0, %2 : vector<40x2xf32>
    %4 = math.cos %3 : vector<40x2xf32>
    %c0_3 = arith.constant 0 : index
    %c0_4 = arith.constant 0 : index
    %5 = vector.load %arg3[%c0_3, %c0_4] : memref<40x1xf32, #tpu.memory_space<vmem>>, vector<40x1xf32>
    %6 = vector.broadcast %5 : vector<40x1xf32> to vector<40x2xf32>
    %7 = arith.mulf %4, %6 : vector<40x2xf32>
    %8 = tpu.iota {dimensions = array<i32: 0>} : vector<40x1xi32>
    %c0_i32 = arith.constant 0 : i32
    %9 = vector.broadcast %c0_i32 : i32 to vector<40x1xi32>
    %10 = arith.cmpi eq, %8, %9 : vector<40x1xi32>
    %cst = arith.constant 1.000000e+00 : f32
    %11 = vector.shape_cast %10 : vector<40x1xi1> to vector<40x1xi1>
    %12 = vector.broadcast %11 : vector<40x1xi1> to vector<40x2xi1>
    %13 = vector.broadcast %cst : f32 to vector<40x2xf32>
    %14 = arith.select %12, %13, %7 : vector<40x2xi1>, vector<40x2xf32>
    %c32 = arith.constant 32 : index
    %c0_5 = arith.constant 0 : index
    %15 = vector.load %arg7[%c32, %c0_5] : memref<72x2xf32, #tpu.memory_space<vmem>>, vector<40x2xf32>
    tpu.vector_store %arg7[%c32, %c0_5], %14 {strides = array<i32>} : memref<72x2xf32, #tpu.memory_space<vmem>>, vector<40x2xf32>,
    %cst_6 = arith.constant 1.000000e+00 : f32
    %16 = vector.broadcast %cst_6 : f32 to vector<32x2xf32>
    %c0_7 = arith.constant 0 : index
    %c0_8 = arith.constant 0 : index
    %17 = vector.load %arg7[%c0_7, %c0_8] : memref<72x2xf32, #tpu.memory_space<vmem>>, vector<32x2xf32>
    tpu.vector_store %arg7[%c0_7, %c0_8], %16 {strides = array<i32>} : memref<72x2xf32, #tpu.memory_space<vmem>>, vector<32x2xf32>,
    %c32_9 = arith.constant 32 : index
    %c0_10 = arith.constant 0 : index
    %18 = vector.load %arg7[%c32_9, %c0_10] : memref<72x2xf32, #tpu.memory_space<vmem>>, vector<40x2xf32>
    %c31 = arith.constant 31 : index
    %c0_11 = arith.constant 0 : index
    %19 = vector.load %arg7[%c31, %c0_11] : memref<72x2xf32, #tpu.memory_space<vmem>>, vector<40x2xf32>
    %20 = arith.mulf %18, %19 : vector<40x2xf32>
    %c32_12 = arith.constant 32 : index
    %c0_13 = arith.constant 0 : index
    %21 = vector.load %arg7[%c32_12, %c0_13] : memref<72x2xf32, #tpu.memory_space<vmem>>, vector<40x2xf32>
    tpu.vector_store %arg7[%c32_12, %c0_13], %20 {strides = array<i32>} : memref<72x2xf32, #tpu.memory_space<vmem>>, vector<40x2xf32>,
    %c32_14 = arith.constant 32 : index
    %c0_15 = arith.constant 0 : index
    %22 = vector.load %arg7[%c32_14, %c0_15] : memref<72x2xf32, #tpu.memory_space<vmem>>, vector<40x2xf32>
    %c30 = arith.constant 30 : index
    %c0_16 = arith.constant 0 : index
    %23 = vector.load %arg7[%c30, %c0_16] : memref<72x2xf32, #tpu.memory_space<vmem>>, vector<40x2xf32>
    %24 = arith.mulf %22, %23 : vector<40x2xf32>
    %c32_17 = arith.constant 32 : index
    %c0_18 = arith.constant 0 : index
    %25 = vector.load %arg7[%c32_17, %c0_18] : memref<72x2xf32, #tpu.memory_space<vmem>>, vector<40x2xf32>
    tpu.vector_store %arg7[%c32_17, %c0_18], %24 {strides = array<i32>} : memref<72x2xf32, #tpu.memory_space<vmem>>, vector<40x2xf32>,
    %c32_19 = arith.constant 32 : index
    %c0_20 = arith.constant 0 : index
    %26 = vector.load %arg7[%c32_19, %c0_20] : memref<72x2xf32, #tpu.memory_space<vmem>>, vector<40x2xf32>
    %c28 = arith.constant 28 : index
    %c0_21 = arith.constant 0 : index
    %27 = vector.load %arg7[%c28, %c0_21] : memref<72x2xf32, #tpu.memory_space<vmem>>, vector<40x2xf32>
    %28 = arith.mulf %26, %27 : vector<40x2xf32>
    %c32_22 = arith.constant 32 : index
    %c0_23 = arith.constant 0 : index
    %29 = vector.load %arg7[%c32_22, %c0_23] : memref<72x2xf32, #tpu.memory_space<vmem>>, vector<40x2xf32>
    tpu.vector_store %arg7[%c32_22, %c0_23], %28 {strides = array<i32>} : memref<72x2xf32, #tpu.memory_space<vmem>>, vector<40x2xf32>,
    %c32_24 = arith.constant 32 : index
    %c0_25 = arith.constant 0 : index
    %30 = vector.load %arg7[%c32_24, %c0_25] : memref<72x2xf32, #tpu.memory_space<vmem>>, vector<40x2xf32>
    %c24 = arith.constant 24 : index
    %c0_26 = arith.constant 0 : index
    %31 = vector.load %arg7[%c24, %c0_26] : memref<72x2xf32, #tpu.memory_space<vmem>>, vector<40x2xf32>
    %32 = arith.mulf %30, %31 : vector<40x2xf32>
    %c32_27 = arith.constant 32 : index
    %c0_28 = arith.constant 0 : index
    %33 = vector.load %arg7[%c32_27, %c0_28] : memref<72x2xf32, #tpu.memory_space<vmem>>, vector<40x2xf32>
    tpu.vector_store %arg7[%c32_27, %c0_28], %32 {strides = array<i32>} : memref<72x2xf32, #tpu.memory_space<vmem>>, vector<40x2xf32>,
    %c32_29 = arith.constant 32 : index
    %c0_30 = arith.constant 0 : index
    %34 = vector.load %arg7[%c32_29, %c0_30] : memref<72x2xf32, #tpu.memory_space<vmem>>, vector<40x2xf32>
    %c16 = arith.constant 16 : index
    %c0_31 = arith.constant 0 : index
    %35 = vector.load %arg7[%c16, %c0_31] : memref<72x2xf32, #tpu.memory_space<vmem>>, vector<40x2xf32>
    %36 = arith.mulf %34, %35 : vector<40x2xf32>
    %c32_32 = arith.constant 32 : index
    %c0_33 = arith.constant 0 : index
    %37 = vector.load %arg7[%c32_32, %c0_33] : memref<72x2xf32, #tpu.memory_space<vmem>>, vector<40x2xf32>
    tpu.vector_store %arg7[%c32_32, %c0_33], %36 {strides = array<i32>} : memref<72x2xf32, #tpu.memory_space<vmem>>, vector<40x2xf32>,
    %c32_34 = arith.constant 32 : index
    %c0_35 = arith.constant 0 : index
    %38 = vector.load %arg7[%c32_34, %c0_35] : memref<72x2xf32, #tpu.memory_space<vmem>>, vector<40x2xf32>
    %c0_36 = arith.constant 0 : index
    %c0_37 = arith.constant 0 : index
    %39 = vector.load %arg7[%c0_36, %c0_37] : memref<72x2xf32, #tpu.memory_space<vmem>>, vector<40x2xf32>
    %40 = arith.mulf %38, %39 : vector<40x2xf32>
    %c32_38 = arith.constant 32 : index
    %c0_39 = arith.constant 0 : index
    %41 = vector.load %arg7[%c32_38, %c0_39] : memref<72x2xf32, #tpu.memory_space<vmem>>, vector<40x2xf32>
    tpu.vector_store %arg7[%c32_38, %c0_39], %40 {strides = array<i32>} : memref<72x2xf32, #tpu.memory_space<vmem>>, vector<40x2xf32>,
    %c32_40 = arith.constant 32 : index
    %c0_41 = arith.constant 0 : index
    %42 = vector.load %arg7[%c32_40, %c0_41] : memref<72x2xf32, #tpu.memory_space<vmem>>, vector<40x2xf32>
    %c0_i32_42 = arith.constant 0 : i32
    %43 = vector.broadcast %c0_i32_42 : i32 to vector<40x1xi32>
    %44 = arith.cmpi eq, %8, %43 : vector<40x1xi32>
    %45 = vector.extract_strided_slice %42 {offsets = [39, 0], sizes = [1, 2], strides = [1, 1]} : vector<40x2xf32> to vector<1x2xf32>
    %46 = vector.extract_strided_slice %7 {offsets = [0, 0], sizes = [1, 2], strides = [1, 1]} : vector<40x2xf32> to vector<1x2xf32>
    %47 = vector.broadcast %46 : vector<1x2xf32> to vector<40x2xf32>
    %48 = arith.mulf %47, %42 : vector<40x2xf32>
    %49 = vector.shape_cast %44 : vector<40x1xi1> to vector<40x1xi1>
    %50 = vector.broadcast %49 : vector<40x1xi1> to vector<40x2xi1>
    %51 = vector.shape_cast %45 : vector<1x2xf32> to vector<1x2xf32>
    %52 = vector.broadcast %51 : vector<1x2xf32> to vector<40x2xf32>
    %53 = arith.select %50, %52, %48 : vector<40x2xi1>, vector<40x2xf32>
    %c0_43 = arith.constant 0 : index
    %c0_44 = arith.constant 0 : index
    %54 = vector.load %arg4[%c0_43, %c0_44] : memref<3x40xf32, #tpu.memory_space<vmem>>, vector<3x40xf32>
    %cst_45 = arith.constant dense<0.000000e+00> : vector<3x2xf32>
    %55 = tpu.matmul %54, %53, %cst_45 {dimension_numbers = #tpu.dot_dimension_numbers<[1], [0], [0], [1], [0, 0, 1, 1], [], []>} : vector<3x40xf32>, vector<40x2xf32>, vector<3x2xf32> -> vector<3x2xf32>
    %c0_46 = arith.constant 0 : index
    %c0_47 = arith.constant 0 : index
    %56 = vector.load %arg5[%c0_46, %c0_47] : memref<3x1xf32, #tpu.memory_space<vmem>>, vector<3x1xf32>
    %57 = vector.broadcast %56 : vector<3x1xf32> to vector<3x2xf32>
    %58 = arith.addf %55, %57 : vector<3x2xf32>
    %59 = vector.extract_strided_slice %58 {offsets = [0, 0], sizes = [1, 2], strides = [1, 1]} : vector<3x2xf32> to vector<1x2xf32>
    %60 = vector.extract_strided_slice %58 {offsets = [1, 0], sizes = [1, 2], strides = [1, 1]} : vector<3x2xf32> to vector<1x2xf32>
    %61 = vector.extract_strided_slice %58 {offsets = [2, 0], sizes = [1, 2], strides = [1, 1]} : vector<3x2xf32> to vector<1x2xf32>
    %62 = arith.maximumf %59, %60 : vector<1x2xf32>
    %63 = arith.maximumf %62, %61 : vector<1x2xf32>
    %64 = arith.subf %59, %63 : vector<1x2xf32>
    %65 = math.exp %64 : vector<1x2xf32>
    %66 = arith.subf %60, %63 : vector<1x2xf32>
    %67 = math.exp %66 : vector<1x2xf32>
    %68 = arith.addf %65, %67 : vector<1x2xf32>
    %69 = arith.subf %61, %63 : vector<1x2xf32>
    %70 = math.exp %69 : vector<1x2xf32>
    %71 = arith.addf %68, %70 : vector<1x2xf32>
    %72 = math.log %71 : vector<1x2xf32>
    %73 = arith.addf %63, %72 : vector<1x2xf32>
    %74 = vector.broadcast %73 : vector<1x2xf32> to vector<3x2xf32>
    %75 = arith.subf %58, %74 : vector<3x2xf32>
    %c0_48 = arith.constant 0 : index
    %c0_49 = arith.constant 0 : index
    %76 = vector.load %arg6[%c0_48, %c0_49] : memref<3x2xf32, #tpu.memory_space<vmem>>, vector<3x2xf32>
    tpu.vector_store %arg6[%c0_48, %c0_49], %75 {strides = array<i32>} : memref<3x2xf32, #tpu.memory_space<vmem>>, vector<3x2xf32>,
    return
  }
  func.func @transform_0(%arg0: i32) -> (i32, i32) {
    %c0_i32 = arith.constant 0 : i32
    %c0_i32_0 = arith.constant 0 : i32
    return %c0_i32, %arg0 : i32, i32
  }
  func.func @transform_1(%arg0: i32) -> (i32, i32) {
    %c0_i32 = arith.constant 0 : i32
    %c0_i32_0 = arith.constant 0 : i32
    %c0_i32_1 = arith.constant 0 : i32
    return %c0_i32, %c0_i32_0 : i32, i32
  }
  func.func @transform_2(%arg0: i32) -> (i32, i32) {
    %c0_i32 = arith.constant 0 : i32
    %c0_i32_0 = arith.constant 0 : i32
    %c0_i32_1 = arith.constant 0 : i32
    return %c0_i32, %c0_i32_0 : i32, i32
  }
  func.func @transform_3(%arg0: i32) -> (i32, i32) {
    %c0_i32 = arith.constant 0 : i32
    %c0_i32_0 = arith.constant 0 : i32
    %c0_i32_1 = arith.constant 0 : i32
    return %c0_i32, %c0_i32_0 : i32, i32
  }
  func.func @transform_4(%arg0: i32) -> (i32, i32) {
    %c0_i32 = arith.constant 0 : i32
    %c0_i32_0 = arith.constant 0 : i32
    %c0_i32_1 = arith.constant 0 : i32
    return %c0_i32, %c0_i32_0 : i32, i32
  }
  func.func @transform_5(%arg0: i32) -> (i32, i32) {
    %c0_i32 = arith.constant 0 : i32
    %c0_i32_0 = arith.constant 0 : i32
    return %c0_i32, %arg0 : i32, i32
  }
}

</mosaic_0001>

<bundles_post_ra>
// kernel: tpu_custom_call.1
= control target key start
LH: loop header
LB: loop body
LE: loop exit
PB: predicated region body
PF: predicated region fallthrough
CT: control target
= control target key end

     0   :  { %v1012_v0 = vmov 0   ;;  %vm636_vm0 = vcmask 15360   ;;  %v1013_v12 = vmov 1.0   ;;  %v610_v55 = vlaneseq  ;;  %s1678_s1 = inlined_call_operand.vmem [shape: f32[40,1], index: 1, kind: input, shape index: {}]   ;;  %s1679_s2 = inlined_call_operand.vmem [shape: f32[40,1], index: 2, kind: input, shape index: {}]   ;;  %s1680_s4 = inlined_call_operand.vmem [shape: f32[3,1], index: 4, kind: input, shape index: {}]   ;;  %s1681_s0 = inlined_call_operand.vmem [shape: f32[40,2], index: 0, kind: input, shape index: {}]   ;;  %s1682_s3 = inlined_call_operand.vmem [shape: f32[3,40], index: 3, kind: input, shape index: {}]   ;;  %s1683_s5 = inlined_call_operand.vmem [shape: f32[3,2], index: 5, kind: output, shape index: {}]  }
   0x1   :  { %983 = vset.pattern.permute.xlu1 %v1012_v0  ;;  %982 = vset.pattern.permute.xlu0 %v1012_v0  ;;  %v27_v1 = vld [vmem:[%s1678_s1 + $0x10] sm:$0xff]  ;;  %v25_v2 = vld [vmem:[%s1678_s1] sm:$0xff]  ;;  %v28_v3 = vld [vmem:[%s1678_s1 + $0x18] sm:$0xff]  ;;  %642 = vst.msk [vmem:[#allocation2] sm:$0xff] %vm636_vm0, %v1013_v12  ;;  %v1014_v56 = vmov 1326507024  }
   0x2   :  { %42 = vperm.xlu1 %983, %v27_v1   ;;  %32 = vperm.xlu0 %982, %v25_v2   ;;  %v26_v4 = vld [vmem:[%s1678_s1 + $0x8] sm:$0xff]  ;;  %v575_v5 = vld [vmem:[%s1679_s2] sm:$0xff]  ;;  %v577_v7 = vld [vmem:[%s1679_s2 + $0x10] sm:$0xff]  ;;  %643 = vst.msk [vmem:[#allocation2 + $0x8] sm:$0xff] %vm636_vm0, %v1013_v12  ;;  %v1015_v1 = vmov 920167782  }
   0x3   :  { %v29_v6 = vld [vmem:[%s1678_s1 + $0x20] sm:$0xff]  ;;  %v576_v8 = vld [vmem:[%s1679_s2 + $0x8] sm:$0xff]  ;;  %v578_v10 = vld [vmem:[%s1679_s2 + $0x18] sm:$0xff]  ;;  %644 = vst.msk [vmem:[#allocation2 + $0x10] sm:$0xff] %vm636_vm0, %v1013_v12 }
   0x4   :  { %v579_v9 = vld [vmem:[%s1679_s2 + $0x20] sm:$0xff]  ;;  %645 = vst.msk [vmem:[#allocation2 + $0x18] sm:$0xff] %vm636_vm0, %v1013_v12  ;;  %v22_v13 = vld [vmem:[%s1681_s0 + $0x10] sm:$0xff]  ;;  %v23_v19 = vld [vmem:[%s1681_s0 + $0x18] sm:$0xff] }
   0x5   :  { %v782_v11 = vld [vmem:[%s1680_s4] sm:$0x7]  ;;  %v21_v20 = vld [vmem:[%s1681_s0 + $0x8] sm:$0xff] }
   0x6   :  { %47 = vperm.xlu1 %983, %v28_v3   ;;  %37 = vperm.xlu0 %982, %v26_v4   ;;  %v20_v14 = vld [vmem:[%s1681_s0] sm:$0xff] }
   0x7   :  { %v24_v45 = vld [vmem:[%s1681_s0 + $0x20] sm:$0xff] }
   0xa   :  { %582 = vperm.xlu1 %983, %v575_v5   ;;  %52 = vperm.xlu0 %982, %v29_v6   ;;  %v1016_v5 = vmov 2102212464  }
   0xe   :  { %592 = vperm.xlu1 %983, %v577_v7   ;;  %587 = vperm.xlu0 %982, %v576_v8  }
  0x12   :  { %602 = vperm.xlu1 %983, %v579_v9   ;;  %597 = vperm.xlu0 %982, %v578_v10  }
  0x16   :  { %785 = vperm.xlu0 %982, %v782_v11  }
  0x81   :  { %v43_v15 = vpop.permute.xlu1 %42  ;;  %v33_v16 = vpop.permute.xlu0 %32 }
  0x82   :  { %v1096_v17 = vadd.f32 %v43_v15, %v22_v13  ;;  %v1098_v18 = vadd.f32 %v33_v16, %v20_v14 }
  0x84   :  { %v269_v21 = vand.u32 2139095040, %v1096_v17  ;;  %v63_v22 = vand.u32 2139095040, %v1098_v18  ;;  %v60_v38 = vand.u32 2147483647, %v1098_v18  ;;  %v266_v41 = vand.u32 2147483647, %v1096_v17 }
  0x85   :  { %v48_v23 = vpop.permute.xlu1 %47  ;;  %v38_v24 = vpop.permute.xlu0 %37 }
  0x86   :  { %v270_v25 = vshrl.u32 %v269_v21, 23  ;;  %v64_v26 = vshrl.u32 %v63_v22, 23  ;;  %v1108_v27 = vadd.f32 %v48_v23, %v23_v19  ;;  %v1110_v28 = vadd.f32 %v38_v24, %v21_v20 }
  0x87   :  { %v67_v48 = vand.u32 8388607, %v60_v38  ;;  %v273_v51 = vand.u32 8388607, %v266_v41  ;;  %v1017_v23 = vmov 683565275  }
  0x88   :  { %v913_v29 = vadd.s32 4294967169, %v270_v25  ;;  %v905_v30 = vadd.s32 4294967169, %v64_v26  ;;  %v372_v31 = vand.u32 2139095040, %v1108_v27  ;;  %v166_v32 = vand.u32 2139095040, %v1110_v28 }
  0x89   :  { %v53_v44 = vpop.permute.xlu0 %52  ;;  %v68_v59 = vor.u32 8388608, %v67_v48  ;;  %v163_v60 = vand.u32 2147483647, %v1110_v28  ;;  %v274_v0 = vor.u32 8388608, %v273_v51  ;;  %v1018_v25 = vmov 2475754826  }
  0x8a   :  { %v276_v33 = vadd.s32 1, %v913_v29  ;;  %v70_v34 = vadd.s32 1, %v905_v30  ;;  %v373_v35 = vshrl.u32 %v372_v31, 23  ;;  %v167_v36 = vshrl.u32 %v166_v32, 23 }
  0x8b   :  { %v1123_v50 = vadd.f32 %v53_v44, %v24_v45  ;;  %v1161_v15 = vshll.u32 %v68_v59, 8  ;;  %v1163_v19 = vshll.u32 %v274_v0, 8  ;;  %v1170_v22 = vand.u32 8388607, %v163_v60 }
  0x8c   :  { %vm277_vm1 = vcmp.gt.s32.totalorder %v276_v33, 0  ;;  %vm71_vm2 = vcmp.gt.s32.totalorder %v70_v34, 0  ;;  %v917_v37 = vadd.s32 4294967169, %v373_v35  ;;  %v909_v43 = vadd.s32 4294967169, %v167_v36 }
  0x8d   :  { %v278_v39 = vsel %vm277_vm1, %v276_v33, 0  ;;  %v72_v40 = vsel %vm71_vm2, %v70_v34, 0  ;;  %v475_v63 = vand.u32 2139095040, %v1123_v50  ;;  %v1019_v30 = vmov 2131351028  }
  0x8e   :  { %v74_v42 = vand.u32 31, %v72_v40  ;;  %v1119_v46 = vand.u32 31, %v278_v39  ;;  %v379_v47 = vadd.s32 1, %v917_v37  ;;  %v173_v52 = vadd.s32 1, %v909_v43 }
  0x8f   :  { %v1134_v61 = vshrl.u32 %v278_v39, 5  ;;  %v1136_v62 = vshrl.u32 %v72_v40, 5  ;;  %v476_v16 = vshrl.u32 %v475_v63, 23  ;;  %vm62_vm2 = vcmp.lt.s32.totalorder %v1098_v18, 0 }
  0x90   :  { %v75_v49 = vsub.s32 32, %v74_v42  ;;  %vm380_vm3 = vcmp.gt.s32.totalorder %v379_v47, 0  ;;  %v1128_v53 = vsub.s32 32, %v1119_v46  ;;  %v89_v3 = vshll.u32 %v1015_v1, %v74_v42 }
  0x91   :  { %v381_v54 = vsel %vm380_vm3, %v379_v47, 0  ;;  %vm174_vm4 = vcmp.gt.s32.totalorder %v173_v52, 0  ;;  %v292_v6 = vshll.u32 %v1016_v5, %v1119_v46  ;;  %v295_v8 = vshll.u32 %v1015_v1, %v1119_v46 }
  0x92   :  { %v90_v57 = vshrl.u32 %v1014_v56, %v75_v49  ;;  %v1131_v58 = vand.u32 31, %v381_v54  ;;  %v87_v2 = vshrl.u32 %v1015_v1, %v75_v49  ;;  %v293_v7 = vshrl.u32 %v1015_v1, %v1128_v53 }
  0x93   :  { %v86_v9 = vshll.u32 %v1016_v5, %v74_v42  ;;  %v296_v10 = vshrl.u32 %v1014_v56, %v1128_v53  ;;  %v175_v14 = vsel %vm174_vm4, %v173_v52, 0  ;;  %vm95_vm5 = vcmp.lt.s32.totalorder %v1136_v62, 4 }
  0x94   :  { %v1142_v4 = vsub.s32 32, %v1131_v58  ;;  %v91_v11 = vor.u32 %v90_v57, %v89_v3  ;;  %v1155_v12 = vshll.u32 %v1015_v1, %v1131_v58  ;;  %vm301_vm6 = vcmp.lt.s32.totalorder %v1134_v61, 4 }
  0x95   :  { %v88_v20 = vor.u32 %v87_v2, %v86_v9  ;;  %v77_v24 = vshll.u32 %v1017_v23, %v74_v42  ;;  %v78_v26 = vshrl.u32 %v1018_v25, %v75_v49  ;;  %v80_v29 = vshll.u32 %v1018_v25, %v74_v42 }
  0x96   :  { %v1159_v13 = vshrl.u32 %v1014_v56, %v1142_v4  ;;  %v81_v31 = vshrl.u32 %v1019_v30, %v75_v49  ;;  %v1177_v32 = vor.u32 %v293_v7, %v292_v6  ;;  %v297_v33 = vor.u32 %v296_v10, %v295_v8 }
  0x97   :  { %v105_v34 = vsel %vm95_vm5, %v91_v11, 1326507024  ;;  %v1181_v35 = vand.u32 31, %v175_v14  ;;  %v79_v36 = vor.u32 %v78_v26, %v77_v24  ;;  %v83_v39 = vshll.u32 %v1019_v30, %v74_v42 }
  0x98   :  { %v400_v21 = vor.u32 %v1159_v13, %v1155_v12  ;;  %v82_v37 = vor.u32 %v81_v31, %v80_v29  ;;  %v84_v40 = vshrl.u32 %v1016_v5, %v75_v49  ;;  %v101_v43 = vsel %vm95_vm5, %v88_v20, 920167782 }
  0x99   :  { %v76_v44 = vshrl.u32 %v1017_v23, %v75_v49  ;;  %vm92_vm7 = vcmp.lt.s32.totalorder %v1136_v62, 1  ;;  %vm94_vm8 = vcmp.lt.s32.totalorder %v1136_v62, 3  ;;  %v1190_v45 = vshrl.u32 %v381_v54, 5 }
  0x9a   :  { %v85_v47 = vor.u32 %v84_v40, %v83_v39  ;;  %v100_v48 = vsel %vm92_vm7, %v79_v36, %v82_v37  ;;  %v106_v51 = vsel %vm94_vm8, %v88_v20, %v105_v34  ;;  %v1195_v42 = vsub.s32 32, %v1181_v35 }
  0x9b   :  { %vm93_vm9 = vcmp.lt.s32.totalorder %v1136_v62, 2  ;;  %v96_v52 = vsel %vm92_vm7, %v76_v44, %v79_v36  ;;  %v921_v57 = vadd.s32 4294967169, %v476_v16  ;;  %v283_v63 = vshll.u32 %v1017_v23, %v1119_v46 }
  0x9c   :  { %v97_v49 = vsel %vm95_vm5, %v85_v47, 2102212464  ;;  %v102_v59 = vsel %vm94_vm8, %v85_v47, %v101_v43  ;;  %v104_v54 = vsel %vm92_vm7, %v82_v37, %v85_v47  ;;  %v284_v3 = vshrl.u32 %v1018_v25, %v1128_v53 }
  0x9d   :  { %v103_v0 = vsel %vm93_vm9, %v100_v48, %v102_v59  ;;  %v107_v2 = vsel %vm93_vm9, %v104_v54, %v106_v51  ;;  %v286_v6 = vshll.u32 %v1018_v25, %v1119_v46  ;;  %v98_v7 = vsel %vm94_vm8, %v82_v37, %v97_v49 }
  0x9e   :  { %v1215_v8 = vmul.u32.u64.low %v1161_v15, %v107_v2  ;;  %v1216_v9 = vmul.u32.u64.high %v1161_v15, %v107_v2, %v1215_v8  ;;  %v482_v10 = vadd.s32 1, %v921_v57  ;;  %v307_v11 = vsel %vm301_vm6, %v1177_v32, 920167782 }
  0x9f   :  { %v1221_v16 = vshrl.u32 %v175_v14, 5  ;;  %v1224_v20 = vmul.u32.u64.low %v1161_v15, %v103_v0  ;;  %v1225_v24 = vmul.u32.u64.high %v1161_v15, %v103_v0, %v1224_v20  ;;  %v190_v26 = vshrl.u32 %v1015_v1, %v1195_v42 }
  0xa0   :  { %v287_v29 = vshrl.u32 %v1019_v30, %v1128_v53  ;;  %v289_v31 = vshll.u32 %v1019_v30, %v1119_v46  ;;  %v290_v34 = vshrl.u32 %v1016_v5, %v1128_v53  ;;  %v311_v14 = vsel %vm301_vm6, %v297_v33, 1326507024 }
  0xa1   :  { %v189_v36 = vshll.u32 %v1016_v5, %v1181_v35  ;;  %v99_v37 = vsel %vm93_vm9, %v96_v52, %v98_v7  ;;  %v285_v39 = vor.u32 %v284_v3, %v283_v63  ;;  %vm117_vm10 = vc.u32 %v1216_v9, %v1224_v20 }
  0xa2   :  { %vm483_vm11 = vcmp.gt.s32.totalorder %v482_v10, 0  ;;  %v288_v40 = vor.u32 %v287_v29, %v286_v6  ;;  %v291_v43 = vor.u32 %v290_v34, %v289_v31  ;;  %v395_v46 = vshll.u32 %v1016_v5, %v1131_v58 }
  0xa3   :  { %v396_v44 = vshrl.u32 %v1015_v1, %v1142_v4  ;;  %v118_v33 = vadd.s32 1, %v1225_v24  ;;  %v282_v47 = vshrl.u32 %v1017_v23, %v1128_v53  ;;  %v1251_v62 = vor.u32 %v190_v26, %v189_v36 }
  0xa4   :  { %v193_v48 = vshrl.u32 %v1014_v56, %v1195_v42  ;;  %v115_v51 = vmul.u32 %v1161_v15, %v99_v37  ;;  %v303_v52 = vsel %vm301_vm6, %v291_v43, 2102212464  ;;  %v484_v49 = vsel %vm483_vm11, %v482_v10, 0 }
  0xa5   :  { %v119_v57 = vsel %vm117_vm10, %v118_v33, %v1225_v24  ;;  %vm298_vm12 = vcmp.lt.s32.totalorder %v1134_v61, 1  ;;  %vm300_vm13 = vcmp.lt.s32.totalorder %v1134_v61, 3  ;;  %vm299_vm14 = vcmp.lt.s32.totalorder %v1134_v61, 2 }
  0xa6   :  { %v120_v59 = vadd.s32 %v119_v57, %v115_v51  ;;  %v306_v53 = vsel %vm298_vm12, %v285_v39, %v288_v40  ;;  %v308_v54 = vsel %vm300_vm13, %v291_v43, %v307_v11  ;;  %v302_v63 = vsel %vm298_vm12, %v282_v47, %v285_v39 }
  0xa7   :  { %v304_v0 = vsel %vm300_vm13, %v288_v40, %v303_v52  ;;  %v309_v15 = vsel %vm299_vm14, %v306_v53, %v308_v54  ;;  %v310_v2 = vsel %vm298_vm12, %v288_v40, %v291_v43  ;;  %v312_v6 = vsel %vm300_vm13, %v1177_v32, %v311_v14 }
  0xa8   :  { %v121_v3 = vadd.s32 536870912, %v120_v59  ;;  %v1266_v7 = vmul.u32.u64.low %v1163_v19, %v309_v15  ;;  %v1267_v8 = vmul.u32.u64.high %v1163_v19, %v309_v15, %v1266_v7  ;;  %v192_v10 = vshll.u32 %v1015_v1, %v1181_v35 }
  0xa9   :  { %vm198_vm15 = vcmp.lt.s32.totalorder %v1221_v16, 4  ;;  %v1273_v11 = vand.u32 31, %v484_v49  ;;  %v313_v24 = vsel %vm299_vm14, %v310_v2, %v312_v6  ;;  %v1277_v26 = vor.u32 %v396_v44, %v395_v46 }
  0xaa   :  { %v122_v29 = vshrl.u32 %v121_v3, 30  ;;  %v1280_v32 = vmul.u32.u64.low %v1163_v19, %v313_v24  ;;  %v1281_v31 = vmul.u32.u64.high %v1163_v19, %v313_v24, %v1280_v32  ;;  %v194_v34 = vor.u32 %v193_v48, %v192_v10 }
  0xab   :  { %v204_v14 = vsel %vm198_vm15, %v1251_v62, 920167782  ;;  %v305_v36 = vsel %vm299_vm14, %v302_v63, %v304_v0  ;;  %v181_v37 = vshrl.u32 %v1018_v25, %v1195_v42  ;;  %v324_v40 = vadd.s32 1, %v1267_v8 }
  0xac   :  { %v123_v39 = vshll.u32 %v122_v29, 30  ;;  %v180_v43 = vshll.u32 %v1017_v23, %v1181_v35  ;;  %v184_v46 = vshrl.u32 %v1019_v30, %v1195_v42  ;;  %v1296_v44 = vsub.s32 32, %v1273_v11 }
  0xad   :  { %v183_v33 = vshll.u32 %v1018_v25, %v1181_v35  ;;  %v186_v61 = vshll.u32 %v1019_v30, %v1181_v35  ;;  %v187_v47 = vshrl.u32 %v1016_v5, %v1195_v42  ;;  %v321_v51 = vmul.u32 %v1163_v19, %v305_v36 }
  0xae   :  { %v1304_v48 = vsub.s32 %v120_v59, %v123_v39  ;;  %vm323_vm1 = vc.u32 %v1281_v31, %v1266_v7  ;;  %v182_v52 = vor.u32 %v181_v37, %v180_v43  ;;  %v208_v57 = vsel %vm198_vm15, %v194_v34, 1326507024 }
  0xaf   :  { %v325_v53 = vsel %vm323_vm1, %v324_v40, %v1267_v8  ;;  %v185_v54 = vor.u32 %v184_v46, %v183_v33  ;;  %v188_v35 = vor.u32 %v187_v47, %v186_v61  ;;  %v116_v63 = vadd.s32 %v1224_v20, %v1216_v9 }
  0xb0   :  { %v126_v59 = vsub.s32 0, %v1304_v48  ;;  %v1316_v0 = vshrl.u32 %v484_v49, 5  ;;  %v326_v19 = vadd.s32 %v325_v53, %v321_v51  ;;  %v499_v15 = vshrl.u32 %v1015_v1, %v1296_v44 }
  0xb1   :  { %v502_v2 = vshrl.u32 %v1014_v56, %v1296_v44  ;;  %v171_v3 = vor.u32 8388608, %v1170_v22  ;;  %vm195_vm3 = vcmp.lt.s32.totalorder %v1221_v16, 1  ;;  %vm1326_vm4 = vcmp.le.f32.partialorder %v60_v38, 0.7853982 }
  0xb2   :  { %v906_v9 = vmin.u32 %v126_v59, %v1304_v48  ;;  %v179_v20 = vshrl.u32 %v1017_v23, %v1195_v42  ;;  %vm197_vm5 = vcmp.lt.s32.totalorder %v1221_v16, 3  ;;  %v203_v56 = vsel %vm195_vm3, %v182_v52, %v185_v54 }
  0xb3   :  { %v146_v49 = vsub.s32 4, %v122_v29  ;;  %v327_v22 = vadd.s32 536870912, %v326_v19  ;;  %v205_v8 = vsel %vm197_vm5, %v188_v35, %v204_v14  ;;  %v207_v38 = vsel %vm195_vm3, %v185_v54, %v188_v35 }
  0xb4   :  { %v128_v10 = vclz %v906_v9  ;;  %vm196_vm6 = vcmp.lt.s32.totalorder %v1221_v16, 2  ;;  %v200_v24 = vsel %vm198_vm15, %v188_v35, 2102212464  ;;  %v209_v42 = vsel %vm197_vm5, %v1251_v62, %v208_v57 }
  0xb5   :  { %v1346_v32 = vshrl.u32 %v327_v22, 30  ;;  %v206_v34 = vsel %vm196_vm6, %v203_v56, %v205_v8  ;;  %v210_v14 = vsel %vm196_vm6, %v207_v38, %v209_v42  ;;  %v211_v36 = vshll.u32 %v171_v3, 8 }
  0xb6   :  { %v907_v37 = vadd.s32 4294967294, %v128_v10  ;;  %v498_v39 = vshll.u32 %v1016_v5, %v1273_v11  ;;  %v501_v40 = vshll.u32 %v1015_v1, %v1273_v11  ;;  %v199_v43 = vsel %vm195_vm3, %v179_v20, %v182_v52 }
  0xb7   :  { %v329_v62 = vshll.u32 %v1346_v32, 30  ;;  %v201_v46 = vsel %vm197_vm5, %v185_v54, %v200_v24  ;;  %v1361_v33 = vmul.u32.u64.low %v211_v36, %v210_v14  ;;  %v1362_v61 = vmul.u32.u64.high %v211_v36, %v210_v14, %v1361_v33 }
  0xb8   :  { %vm908_vm7 = vcmp.lt.s32.totalorder %v907_v37, 0  ;;  %v147_v47 = vsel %vm62_vm2, %v146_v49, %v122_v29  ;;  %v1366_v51 = vmul.u32.u64.low %v211_v36, %v206_v34  ;;  %v1367_v57 = vmul.u32.u64.high %v211_v36, %v206_v34, %v1366_v51 }
  0xb9   :  { %v131_v1 = vsel %vm908_vm7, 0, %v907_v37  ;;  %v1370_v53 = vor.u32 %v499_v15, %v498_v39  ;;  %v503_v52 = vor.u32 %v502_v2, %v501_v40  ;;  %v1372_v35 = vsub.s32 %v326_v19, %v329_v62 }
  0xba   :  { %v132_v59 = vsub.s32 32, %v131_v1  ;;  %v136_v3 = vsub.s32 4294967266, %v131_v1  ;;  %vm507_vm8 = vcmp.lt.s32.totalorder %v1316_v0, 4  ;;  %v202_v54 = vsel %vm196_vm6, %v199_v43, %v201_v46 }
  0xbb   :  { %v149_v29 = vsel %vm1326_vm4, 0, %v147_v47  ;;  %v332_v9 = vsub.s32 0, %v1372_v35  ;;  %vm220_vm9 = vc.u32 %v1362_v61, %v1366_v51  ;;  %v472_v15 = vand.u32 2147483647, %v1123_v50 }
  0xbc   :  { %v133_v19 = vshll.u32 %v1304_v48, %v131_v1  ;;  %v134_v2 = vshrl.u32 %v116_v63, %v132_v59  ;;  %v137_v20 = vadd.s32 127, %v136_v3  ;;  %vm268_vm10 = vcmp.lt.s32.totalorder %v1096_v17, 0 }
  0xbd   :  { %v221_v56 = vadd.s32 1, %v1367_v57  ;;  %v513_v16 = vsel %vm507_vm8, %v1370_v53, 920167782  ;;  %v1391_v49 = vsel %vm507_vm8, %v503_v52, 1326507024  ;;  %v914_v22 = vmin.u32 %v332_v9, %v1372_v35 }
  0xbe   :  { %v218_v8 = vmul.u32 %v211_v36, %v202_v54  ;;  %v135_v38 = vor.u32 %v134_v2, %v133_v19  ;;  %v138_v10 = vshll.u32 %v137_v20, 23  ;;  %v322_v48 = vadd.s32 %v1266_v7, %v1281_v31 }
  0xbf   :  { %v222_v63 = vsel %vm220_vm9, %v221_v56, %v1367_v57  ;;  %v1397_v24 = vand.u32 3, %v149_v29  ;;  %v334_v42 = vclz %v914_v22  ;;  %v490_v14 = vshrl.u32 %v1018_v25, %v1296_v44 }
  0xc0   :  { %v223_v34 = vadd.s32 %v222_v63, %v218_v8  ;;  %v139_v37 = vor.u32 4788187, %v138_v10  ;;  %v352_v39 = vsub.s32 4, %v1346_v32  ;;  %v479_v36 = vand.u32 8388607, %v472_v15 }
  0xc1   :  { %v493_v40 = vshrl.u32 %v1019_v30, %v1296_v44  ;;  %v142_v43 = vcvt.s32.f32 %v135_v38  ;;  %v915_v7 = vadd.s32 4294967294, %v334_v42  ;;  %v489_v62 = vshll.u32 %v1017_v23, %v1273_v11 }
  0xc2   :  { %v224_v31 = vadd.s32 536870912, %v223_v34  ;;  %v140_v46 = vand.u32 2147483647, %v139_v37  ;;  %v492_v33 = vshll.u32 %v1018_v25, %v1273_v11  ;;  %v495_v47 = vshll.u32 %v1019_v30, %v1273_v11 }
  0xc3   :  { %v496_v57 = vshrl.u32 %v1016_v5, %v1296_v44  ;;  %vm1416_vm11 = vcmp.le.f32.partialorder %v266_v41, 0.7853982  ;;  %vm916_vm12 = vcmp.lt.s32.totalorder %v915_v7, 0  ;;  %v488_v59 = vshrl.u32 %v1017_v23, %v1296_v44 }
  0xc4   :  { %v1420_v52 = vshrl.u32 %v224_v31, 30  ;;  %v491_v3 = vor.u32 %v490_v14, %v489_v62  ;;  %v143_v54 = vmul.f32 %v142_v43, %v140_v46  ;;  %v337_v29 = vsel %vm916_vm12, 0, %v915_v7 }
  0xc5   :  { %v494_v9 = vor.u32 %v493_v40, %v492_v33  ;;  %v497_v11 = vor.u32 %v496_v57, %v495_v47  ;;  %vm404_vm13 = vcmp.lt.s32.totalorder %v1190_v45, 4  ;;  %v338_v19 = vsub.s32 32, %v337_v29 }
  0xc6   :  { %v342_v2 = vsub.s32 4294967266, %v337_v29  ;;  %v353_v41 = vsel %vm268_vm10, %v352_v39, %v1346_v32  ;;  %v226_v20 = vshll.u32 %v1420_v52, 30  ;;  %v144_v56 = vxor.u32 2147483648, %v143_v54 }
  0xc7   :  { %v480_v22 = vor.u32 8388608, %v479_v36  ;;  %vm504_vm14 = vcmp.lt.s32.totalorder %v1316_v0, 1  ;;  %vm506_vm15 = vcmp.lt.s32.totalorder %v1316_v0, 3  ;;  %v339_v44 = vshll.u32 %v1372_v35, %v337_v29 }
  0xc8   :  { %v340_v8 = vshrl.u32 %v322_v48, %v338_v19  ;;  %v343_v38 = vadd.s32 127, %v342_v2  ;;  %v1432_v10 = vsub.s32 %v223_v34, %v226_v20  ;;  %v145_v63 = vsel %vm62_vm2, %v144_v56, %v143_v54 }
  0xc9   :  { %v509_v32 = vsel %vm507_vm8, %v497_v11, 2102212464  ;;  %v512_v42 = vsel %vm504_vm14, %v491_v3, %v494_v9  ;;  %v514_v14 = vsel %vm506_vm15, %v497_v11, %v513_v16  ;;  %v148_v35 = vsel %vm1326_vm4, %v1098_v18, %v145_v63 }
  0xca   :  { %v341_v48 = vor.u32 %v340_v8, %v339_v44  ;;  %v344_v37 = vshll.u32 %v343_v38, 23  ;;  %v229_v34 = vsub.s32 0, %v1432_v10  ;;  %984 = vcosq.f32 %v148_v35 }
  0xcb   :  { %vm505_vm1 = vcmp.lt.s32.totalorder %v1316_v0, 2  ;;  %v508_v39 = vsel %vm504_vm14, %v488_v59, %v491_v3  ;;  %v516_v36 = vsel %vm504_vm14, %v494_v9, %v497_v11  ;;  %986 = vsinq.f32 %v148_v35 }
  0xcc   :  { %v345_v40 = vor.u32 4788187, %v344_v37  ;;  %v910_v16 = vmin.u32 %v229_v34, %v1432_v10  ;;  %v510_v6 = vsel %vm506_vm15, %v494_v9, %v509_v32  ;;  %v348_v43 = vcvt.s32.f32 %v341_v48 }
  0xcd   :  { %v355_v7 = vsel %vm1416_vm11, 0, %v353_v41  ;;  %v515_v31 = vsel %vm505_vm1, %v512_v42, %v514_v14  ;;  %v518_v62 = vsel %vm506_vm15, %v1370_v53, %v1391_v49  ;;  %v520_v57 = vshll.u32 %v480_v22, 8 }
  0xce   :  { %v346_v46 = vand.u32 2147483647, %v345_v40  ;;  %v231_v33 = vclz %v910_v16  ;;  %v519_v47 = vsel %vm505_vm1, %v516_v36, %v518_v62  ;;  %v1467_v59 = vsel %vm404_vm13, %v1277_v26, 920167782 }
  0xcf   :  { %v1474_v3 = vsel %vm404_vm13, %v400_v21, 1326507024  ;;  %v1477_v53 = vshrl.u32 %v610_v55, 7  ;;  %v511_v49 = vsel %vm505_vm1, %v508_v39, %v510_v6  ;;  %vm155_vm2 = vcmp.eq.s32.totalorder %v1397_v24, 0 }
  0xd0   :  { %v349_v54 = vmul.f32 %v348_v43, %v346_v46  ;;  %v911_v29 = vadd.s32 4294967294, %v231_v33  ;;  %v1482_v9 = vmul.u32.u64.low %v520_v57, %v519_v47  ;;  %v1483_v11 = vmul.u32.u64.high %v520_v57, %v519_v47, %v1482_v9  ;;  %v583_v47 = vpop.permute.xlu1 %582 }
  0xd1   :  { %vm154_vm3 = vcmp.lt.s32.totalorder %v1397_v24, 2  ;;  %vm158_vm4 = vcmp.eq.s32.totalorder %v1397_v24, 2  ;;  %v1487_v12 = vand.u32 3, %v355_v7  ;;  %vm152_vm5 = vweird.f32 %v1098_v18 }
  0xd2   :  { %v1489_v13 = vmul.u32.u64.low %v520_v57, %v515_v31  ;;  %v1490_v21 = vmul.u32.u64.high %v520_v57, %v515_v31, %v1489_v13  ;;  %v350_v55 = vxor.u32 2147483648, %v349_v54  ;;  %v219_v0 = vadd.s32 %v1366_v51, %v1362_v61 }
  0xd3   :  { %vm912_vm6 = vcmp.lt.s32.totalorder %v911_v29, 0  ;;  %v249_v19 = vsub.s32 4, %v1420_v52  ;;  %vm616_vm7 = vcmp.eq.s32.totalorder %v1477_v53, 0  ;;  %v527_v41 = vmul.u32 %v520_v57, %v511_v49 }
  0xd4   :  { %v234_v2 = vsel %vm912_vm6, 0, %v911_v29  ;;  %v369_v20 = vand.u32 2147483647, %v1108_v27  ;;  %v385_v56 = vshrl.u32 %v1017_v23, %v1142_v4  ;;  %v351_v22 = vsel %vm268_vm10, %v350_v55, %v349_v54  ;;  %v985_v51 = vpop.eup %984 }
  0xd5   :  { %v235_v44 = vsub.s32 32, %v234_v2  ;;  %v239_v8 = vsub.s32 4294967266, %v234_v2  ;;  %v387_v61 = vshrl.u32 %v1018_v25, %v1142_v4  ;;  %v354_v38 = vsel %vm1416_vm11, %v1096_v17, %v351_v22  ;;  %v987_v42 = vpop.eup %986 }
  0xd6   :  { %v236_v63 = vshll.u32 %v1432_v10, %v234_v2  ;;  %vm529_vm8 = vc.u32 %v1483_v11, %v1489_v13  ;;  %v530_v32 = vadd.s32 1, %v1490_v21  ;;  %v159_v14 = vxor.u32 2147483648, %v985_v51 }
  0xd7   :  { %988 = vcosq.f32 %v354_v38  ;;  %v237_v35 = vshrl.u32 %v219_v0, %v235_v44  ;;  %v240_v48 = vadd.s32 127, %v239_v8  ;;  %v156_v37 = vxor.u32 2147483648, %v987_v42 }
  0xd8   :  { %990 = vsinq.f32 %v354_v38  ;;  %v531_v34 = vsel %vm529_vm8, %v530_v32, %v1490_v21  ;;  %v386_v1 = vshll.u32 %v1017_v23, %v1131_v58  ;;  %v160_v10 = vsel %vm158_vm4, %v159_v14, %v987_v42 }
  0xd9   :  { %v238_v39 = vor.u32 %v237_v35, %v236_v63  ;;  %v241_v36 = vshll.u32 %v240_v48, 23  ;;  %v532_v40 = vadd.s32 %v531_v34, %v527_v41  ;;  %v157_v16 = vsel %vm155_vm2, %v985_v51, %v156_v37 }
  0xda   :  { %vm165_vm9 = vcmp.lt.s32.totalorder %v1110_v28, 0  ;;  %v388_v6 = vor.u32 %v387_v61, %v386_v1  ;;  %v389_v43 = vshll.u32 %v1018_v25, %v1131_v58  ;;  %v390_v7 = vshrl.u32 %v1019_v30, %v1142_v4 }
  0xdb   :  { %v161_v23 = vsel %vm154_vm3, %v157_v16, %v160_v10  ;;  %vm1528_vm10 = vcmp.le.f32.partialorder %v163_v60, 0.7853982  ;;  %v242_v62 = vor.u32 4788187, %v241_v36  ;;  %v533_v46 = vadd.s32 536870912, %v532_v40 }
  0xdc   :  { %v392_v33 = vshll.u32 %v1019_v30, %v1131_v58  ;;  %v162_v25 = vsel %vm152_vm5, nan, %v161_v23  ;;  %v245_v57 = vcvt.s32.f32 %v238_v39  ;;  %v391_v49 = vor.u32 %v390_v7, %v389_v43  ;;  %v593_v39 = vpop.permute.xlu1 %592 }
  0xdd   :  { %v393_v24 = vshrl.u32 %v1016_v5, %v1142_v4  ;;  %v1538_v54 = vmul.f32 %v583_v47, %v162_v25  ;;  %v243_v60 = vand.u32 2147483647, %v242_v62  ;;  %v1540_v29 = vshrl.u32 %v533_v46, 30 }
  0xde   :  { %vm401_vm11 = vcmp.lt.s32.totalorder %v1190_v45, 1  ;;  %vm358_vm12 = vweird.f32 %v1096_v17  ;;  %v376_v58 = vand.u32 8388607, %v369_v20  ;;  %vm403_vm14 = vcmp.lt.s32.totalorder %v1190_v45, 3 }
  0xdf   :  { %v394_v30 = vor.u32 %v393_v24, %v392_v33  ;;  %v405_v18 = vsel %vm401_vm11, %v385_v56, %v388_v6  ;;  %v409_v9 = vsel %vm401_vm11, %v388_v6, %v391_v49  ;;  %v631_v21 = vsel %vm616_vm7, 1.0, %v1538_v54 }
  0xe0   :  { %v246_v4 = vmul.f32 %v245_v57, %v243_v60  ;;  %v535_v5 = vshll.u32 %v1540_v29, 30  ;;  %637 = vst.msk [vmem:[#allocation2 + $0x20] sm:$0xff] %vm636_vm0, %v631_v21  ;;  %vm402_vm15 = vcmp.lt.s32.totalorder %v1190_v45, 2  ;;  %v377_v38 = vor.u32 8388608, %v376_v58 }
  0xe1   :  { %v406_v55 = vsel %vm404_vm13, %v394_v30, 2102212464  ;;  %v411_v0 = vsel %vm403_vm14, %v394_v30, %v1467_v59  ;;  %v413_v2 = vsel %vm401_vm11, %v391_v49, %v394_v30  ;;  %v989_v41 = vpop.eup %988  ;;  %v415_v32 = vsel %vm403_vm14, %v1277_v26, %v1474_v3 }
  0xe2   :  { %v247_v56 = vxor.u32 2147483648, %v246_v4  ;;  %v536_v22 = vsub.s32 %v532_v40, %v535_v5  ;;  %v407_v44 = vsel %vm403_vm14, %v391_v49, %v406_v55  ;;  %v412_v8 = vsel %vm402_vm15, %v409_v9, %v411_v0  ;;  %v991_v61 = vpop.eup %990 }
  0xe3   :  { %v365_v51 = vxor.u32 2147483648, %v989_v41  ;;  %v408_v63 = vsel %vm402_vm15, %v405_v18, %v407_v44  ;;  %v362_v42 = vxor.u32 2147483648, %v991_v61  ;;  %vm364_vm13 = vcmp.eq.s32.totalorder %v1487_v12, 2 }
  0xe4   :  { %v248_v59 = vsel %vm165_vm9, %v247_v56, %v246_v4  ;;  %v538_v14 = vsub.s32 0, %v536_v22  ;;  %vm361_vm1 = vcmp.eq.s32.totalorder %v1487_v12, 0  ;;  %v416_v37 = vsel %vm402_vm15, %v413_v2, %v415_v32  ;;  %v588_v56 = vpop.permute.xlu0 %587 }
  0xe5   :  { %v366_v35 = vsel %vm364_vm13, %v365_v51, %v991_v61  ;;  %v251_v48 = vsel %vm1528_vm10, %v1110_v28, %v248_v59  ;;  %vm360_vm2 = vcmp.lt.s32.totalorder %v1487_v12, 2  ;;  %v363_v26 = vsel %vm361_vm1, %v989_v41, %v362_v42 }
  0xe6   :  { %992 = vcosq.f32 %v251_v48  ;;  %v922_v3 = vmin.u32 %v538_v14, %v536_v22  ;;  %v367_v34 = vsel %vm360_vm2, %v363_v26, %v366_v35  ;;  %v250_v1 = vsel %vm165_vm9, %v249_v19, %v1420_v52 }
  0xe7   :  { %994 = vsinq.f32 %v251_v48  ;;  %v417_v10 = vshll.u32 %v377_v38, 8  ;;  %v368_v36 = vsel %vm358_vm12, nan, %v367_v34  ;;  %v252_v6 = vsel %vm1528_vm10, 0, %v250_v1  ;;  %v646_v32 = vld [vmem:[#allocation2 + $0x20] sm:$0xff] }
  0xe8   :  { %v540_v45 = vclz %v922_v3  ;;  %v607_v40 = vmul.f32 %v593_v39, %v368_v36  ;;  %v1020_v52 = vmov 0.0|0.0   ;;  %v256_v17 = vand.u32 3, %v252_v6  ;;  %v651_v42 = vld [vmem:[#allocation2 + $0x1f] sm:$0xff] }
  0xe9   :  { %v1579_v16 = vmul.u32.u64.low %v417_v10, %v416_v37  ;;  %v1580_v12 = vmul.u32.u64.high %v417_v10, %v416_v37, %v1579_v16  ;;  %v1584_v7 = vmul.u32.u64.low %v417_v10, %v412_v8  ;;  %v1585_v23 = vmul.u32.u64.high %v417_v10, %v412_v8, %v1584_v7  ;;  %945 = vmatprep.subr.bf16.mxu0 %v1020_v52 }
  0xea   :  { %v923_v43 = vadd.s32 4294967294, %v540_v45  ;;  %639 = vst.msk [vmem:[#allocation2 + $0x30] sm:$0xff] %vm636_vm0, %v607_v40  ;;  %v528_v31 = vadd.s32 %v1489_v13, %v1483_v11  ;;  %v424_v25 = vmul.u32 %v417_v10, %v408_v63  ;;  %vm261_vm5 = vcmp.eq.s32.totalorder %v256_v17, 2 }
  0xeb   :  { %v1590_v62 = vadd.s32 %v1584_v7, %v1580_v12  ;;  %vm426_vm4 = vc.u32 %v1580_v12, %v1584_v7  ;;  %v427_v47 = vadd.s32 1, %v1585_v23  ;;  %vm258_vm6 = vcmp.eq.s32.totalorder %v256_v17, 0 }
  0xec   :  { %vm924_vm3 = vcmp.lt.s32.totalorder %v923_v43, 0  ;;  %vm257_vm8 = vcmp.lt.s32.totalorder %v256_v17, 2  ;;  %vm255_vm9 = vweird.f32 %v1110_v28  ;;  %vm474_vm10 = vcmp.lt.s32.totalorder %v1123_v50, 0 }
  0xed   :  { %v543_v19 = vsel %vm924_vm3, 0, %v923_v43  ;;  %v428_v58 = vsel %vm426_vm4, %v427_v47, %v1585_v23  ;;  %vm1021_vm11 = vmmov 0   ;;  %v1022_v14 = vmov 0.0  }
  0xee   :  { %v544_v46 = vsub.s32 32, %v543_v19  ;;  %v548_v33 = vsub.s32 4294967266, %v543_v19  ;;  %v545_v49 = vshll.u32 %v536_v22, %v543_v19  ;;  %v429_v9 = vadd.s32 %v428_v58, %v424_v25  ;;  %942 = vmatprep.mubr.msk.f32.mxu0 %vm1021_vm11, %v1022_v14 }
  0xef   :  { %vm1606_vm12 = vcmp.le.f32.partialorder %v472_v15, 0.7853982  ;;  %v558_v37 = vsub.s32 4, %v1540_v29  ;;  %v656_v26 = vmul.f32 %v651_v42, %v646_v32  ;;  %vm564_vm2 = vweird.f32 %v1123_v50  ;;  %v598_v42 = vpop.permute.xlu0 %597 }
  0xf0   :  { %v993_v57 = vpop.eup %992  ;;  %v546_v24 = vshrl.u32 %v528_v31, %v544_v46  ;;  %v549_v60 = vadd.s32 127, %v548_v33  ;;  %v430_v13 = vadd.s32 536870912, %v429_v9  ;;  %vm371_vm3 = vcmp.lt.s32.totalorder %v1108_v27, 0 }
  0xf1   :  { %v995_v30 = vpop.eup %994  ;;  %v262_v18 = vxor.u32 2147483648, %v993_v57  ;;  %v559_v15 = vsel %vm474_vm10, %v558_v37, %v1540_v29  ;;  %vm370_vm4 = vcmp.le.f32.partialorder %v369_v20, 0.7853982 }
  0xf2   :  { %v259_v21 = vxor.u32 2147483648, %v995_v30  ;;  %v547_v4 = vor.u32 %v546_v24, %v545_v49  ;;  %v550_v5 = vshll.u32 %v549_v60, 23  ;;  %v1598_v41 = vshrl.u32 %v430_v13, 30 }
  0xf3   :  { %v263_v11 = vsel %vm261_vm5, %v262_v18, %v995_v30  ;;  %v561_v16 = vsel %vm1606_vm12, 0, %v559_v15 }
  0xf4   :  { %v260_v55 = vsel %vm258_vm6, %v993_v57, %v259_v21  ;;  %v551_v0 = vor.u32 4788187, %v550_v5  ;;  %v554_v8 = vcvt.s32.f32 %v547_v4  ;;  %v432_v51 = vshll.u32 %v1598_v41, 30  ;;  %v603_v4 = vpop.permute.xlu1 %602 }
  0xf5   :  { %v264_v2 = vsel %vm257_vm8, %v260_v55, %v263_v11  ;;  %v565_v7 = vand.u32 3, %v561_v16 }
  0xf6   :  { %v265_v22 = vsel %vm255_vm9, nan, %v264_v2  ;;  %v552_v44 = vand.u32 2147483647, %v551_v0  ;;  %v433_v63 = vsub.s32 %v429_v9, %v432_v51  ;;  %v455_v2 = vsub.s32 4, %v1598_v41 }
  0xf7   :  { %v606_v61 = vmul.f32 %v588_v56, %v265_v22  ;;  %vm570_vm15 = vcmp.eq.s32.totalorder %v565_v7, 2  ;;  %vm567_vm13 = vcmp.eq.s32.totalorder %v565_v7, 0  ;;  %vm566_vm1 = vcmp.lt.s32.totalorder %v565_v7, 2 }
  0xf8   :  { %v555_v38 = vmul.f32 %v554_v8, %v552_v44  ;;  %v435_v28 = vsub.s32 0, %v433_v63  ;;  %v456_v56 = vsel %vm371_vm3, %v455_v2, %v1598_v41  ;;  %vm461_vm9 = vweird.f32 %v1108_v27  ;;  %v648_v41 = vld [vmem:[#allocation2 + $0x30] sm:$0xff] }
  0xf9   :  { %638 = vst.msk [vmem:[#allocation2 + $0x28] sm:$0xff] %vm636_vm0, %v606_v61  ;;  %v458_v22 = vsel %vm370_vm4, 0, %v456_v56  ;;  %v727_v2 = vld [vmem:[#allocation2 + $0x10] sm:$0xff] }
  0xfa   :  { %v556_v59 = vxor.u32 2147483648, %v555_v38  ;;  %v918_v34 = vmin.u32 %v435_v28, %v433_v63  ;;  %v462_v44 = vand.u32 3, %v458_v22 }
  0xfc   :  { %v557_v48 = vsel %vm474_vm10, %v556_v59, %v555_v38  ;;  %v437_v1 = vclz %v918_v34  ;;  %vm467_vm5 = vcmp.eq.s32.totalorder %v462_v44, 2  ;;  %vm464_vm6 = vcmp.eq.s32.totalorder %v462_v44, 0 }
  0xfd   :  { %v560_v3 = vsel %vm1606_vm12, %v1123_v50, %v557_v48  ;;  %vm463_vm8 = vcmp.lt.s32.totalorder %v462_v44, 2 }
  0xfe   :  { %996 = vcosq.f32 %v560_v3  ;;  %v919_v45 = vadd.s32 4294967294, %v437_v1 }
  0xff   :  { %998 = vsinq.f32 %v560_v3 }
 0x100   :  { %v647_v10 = vld [vmem:[#allocation2 + $0x28] sm:$0xff]  ;;  %vm920_vm14 = vcmp.lt.s32.totalorder %v919_v45, 0 }
 0x101   :  { %v652_v39 = vld [vmem:[#allocation2 + $0x27] sm:$0xff]  ;;  %v1620_v40 = vld [vmem:[#allocation2 + $0x2f] sm:$0xff]  ;;  %v440_v12 = vsel %vm920_vm14, 0, %v919_v45 }
 0x102   :  { %v657_v36 = vmul.f32 %v652_v39, %v647_v10  ;;  %661 = vst.msk [vmem:[#allocation2 + $0x20] sm:$0xff] %vm636_vm0, %v656_v26  ;;  %v441_v6 = vsub.s32 32, %v440_v12  ;;  %v445_v43 = vsub.s32 4294967266, %v440_v12  ;;  %v442_v23 = vshll.u32 %v433_v63, %v440_v12 }
 0x103   :  { %v658_v35 = vmul.f32 %v1620_v40, %v648_v41 }
 0x104   :  { %662 = vst.msk [vmem:[#allocation2 + $0x28] sm:$0xff] %vm636_vm0, %v657_v36  ;;  %v443_v17 = vshrl.u32 %v1590_v62, %v441_v6  ;;  %v446_v29 = vadd.s32 127, %v445_v43 }
 0x106   :  { %v444_v25 = vor.u32 %v443_v17, %v442_v23  ;;  %v447_v57 = vshll.u32 %v446_v29, 23 }
 0x108   :  { %v997_v19 = vpop.eup %996  ;;  %v448_v30 = vor.u32 4788187, %v447_v57  ;;  %v451_v21 = vcvt.s32.f32 %v444_v25 }
 0x109   :  { %v666_v31 = vld [vmem:[#allocation2 + $0x20] sm:$0xff]  ;;  %v999_v33 = vpop.eup %998  ;;  %v571_v47 = vxor.u32 2147483648, %v997_v19 }
 0x10a   :  { %v671_v46 = vld [vmem:[#allocation2 + $0x1e] sm:$0xff]  ;;  %v568_v60 = vxor.u32 2147483648, %v999_v33  ;;  %v449_v9 = vand.u32 2147483647, %v448_v30 }
 0x10b   :  { %v676_v49 = vmul.f32 %v671_v46, %v666_v31  ;;  %v672_v24 = vld [vmem:[#allocation2 + $0x26] sm:$0xff]  ;;  %v572_v58 = vsel %vm570_vm15, %v571_v47, %v999_v33  ;;  %v711_v30 = vld [vmem:[#allocation2 + $0x18] sm:$0xff] }
 0x10c   :  { %v569_v18 = vsel %vm567_vm13, %v997_v19, %v568_v60  ;;  %v452_v13 = vmul.f32 %v451_v21, %v449_v9  ;;  %v667_v10 = vld [vmem:[#allocation2 + $0x28] sm:$0xff] }
 0x10d   :  { %681 = vst.msk [vmem:[#allocation2 + $0x20] sm:$0xff] %vm636_vm0, %v676_v49  ;;  %v573_v62 = vsel %vm566_vm1, %v569_v18, %v572_v58 }
 0x10e   :  { %v574_v5 = vsel %vm564_vm2, nan, %v573_v62  ;;  %v453_v55 = vxor.u32 2147483648, %v452_v13 }
 0x10f   :  { %v609_v11 = vmul.f32 %v603_v4, %v574_v5 }
 0x110   :  { %v454_v0 = vsel %vm371_vm3, %v453_v55, %v452_v13 }
 0x111   :  { %641 = vst.msk [vmem:[#allocation2 + $0x40] sm:$0xff] %vm636_vm0, %v609_v11  ;;  %v457_v50 = vsel %vm370_vm4, %v1108_v27, %v454_v0  ;;  %v677_v27 = vmul.f32 %v672_v24, %v667_v10  ;;  %v765_v10 = vsub.s32 0, %v1477_v53 }
 0x112   :  { %1000 = vcosq.f32 %v457_v50 }
 0x113   :  { %1002 = vsinq.f32 %v457_v50 }
 0x114   :  { %v686_v45 = vld [vmem:[#allocation2 + $0x20] sm:$0xff] }
 0x115   :  { %v691_v40 = vld [vmem:[#allocation2 + $0x1c] sm:$0xff] }
 0x116   :  { %v696_v17 = vmul.f32 %v691_v40, %v686_v45 }
 0x118   :  { %v650_v48 = vld [vmem:[#allocation2 + $0x40] sm:$0xff] }
 0x11c   :  { %v1001_v8 = vpop.eup %1000 }
 0x11d   :  { %v1003_v61 = vpop.eup %1002  ;;  %v468_v51 = vxor.u32 2147483648, %v1001_v8 }
 0x11e   :  { %v465_v38 = vxor.u32 2147483648, %v1003_v61 }
 0x11f   :  { %v469_v63 = vsel %vm467_vm5, %v468_v51, %v1003_v61 }
 0x120   :  { %v466_v20 = vsel %vm464_vm6, %v1001_v8, %v465_v38 }
 0x121   :  { %v470_v32 = vsel %vm463_vm8, %v466_v20, %v469_v63 }
 0x122   :  { %v471_v59 = vsel %vm461_vm9, nan, %v470_v32  ;;  %v744_v32 = vld [vmem:[#allocation2] sm:$0xff] }
 0x123   :  { %v608_v28 = vmul.f32 %v598_v42, %v471_v59  ;;  %v745_v59 = vld [vmem:[#allocation2 + $0x8] sm:$0xff] }
 0x125   :  { %640 = vst.msk [vmem:[#allocation2 + $0x38] sm:$0xff] %vm636_vm0, %v608_v28 }
 0x12c   :  { %v649_v37 = vld [vmem:[#allocation2 + $0x38] sm:$0xff] }
 0x12d   :  { %v654_v26 = vld [vmem:[#allocation2 + $0x37] sm:$0xff]  ;;  %v655_v3 = vld [vmem:[#allocation2 + $0x3f] sm:$0xff] }
 0x12e   :  { %v659_v34 = vmul.f32 %v654_v26, %v649_v37  ;;  %v660_v1 = vmul.f32 %v655_v3, %v650_v48  ;;  %663 = vst.msk [vmem:[#allocation2 + $0x30] sm:$0xff] %vm636_vm0, %v658_v35 }
 0x130   :  { %664 = vst.msk [vmem:[#allocation2 + $0x38] sm:$0xff] %vm636_vm0, %v659_v34  ;;  %665 = vst.msk [vmem:[#allocation2 + $0x40] sm:$0xff] %vm636_vm0, %v660_v1 }
 0x135   :  { %v668_v39 = vld [vmem:[#allocation2 + $0x30] sm:$0xff] }
 0x136   :  { %v673_v15 = vld [vmem:[#allocation2 + $0x2e] sm:$0xff] }
 0x137   :  { %v678_v36 = vmul.f32 %v673_v15, %v668_v39  ;;  %682 = vst.msk [vmem:[#allocation2 + $0x28] sm:$0xff] %vm636_vm0, %v677_v27  ;;  %v669_v16 = vld [vmem:[#allocation2 + $0x38] sm:$0xff]  ;;  %v670_v12 = vld [vmem:[#allocation2 + $0x40] sm:$0xff]  ;;  %v774_v27 = vsub.s32 7, %v1477_v53  ;;  %v766_v15 = vrot.slane %v1538_v54, %v765_v10  ;;  %v786_v53 = vpop.permute.xlu0 %785 }
 0x138   :  { %v674_v6 = vld [vmem:[#allocation2 + $0x36] sm:$0xff]  ;;  %v675_v43 = vld [vmem:[#allocation2 + $0x3e] sm:$0xff] }
 0x139   :  { %v679_v7 = vmul.f32 %v674_v6, %v669_v16  ;;  %683 = vst.msk [vmem:[#allocation2 + $0x30] sm:$0xff] %vm636_vm0, %v678_v36  ;;  %v680_v23 = vmul.f32 %v675_v43, %v670_v12 }
 0x13b   :  { %684 = vst.msk [vmem:[#allocation2 + $0x38] sm:$0xff] %vm636_vm0, %v679_v7  ;;  %685 = vst.msk [vmem:[#allocation2 + $0x40] sm:$0xff] %vm636_vm0, %v680_v23 }
 0x13e   :  { %v687_v29 = vld [vmem:[#allocation2 + $0x28] sm:$0xff] }
 0x13f   :  { %v692_v19 = vld [vmem:[#allocation2 + $0x24] sm:$0xff] }
 0x140   :  { %v697_v31 = vmul.f32 %v692_v19, %v687_v29  ;;  %701 = vst.msk [vmem:[#allocation2 + $0x20] sm:$0xff] %vm636_vm0, %v696_v17  ;;  %v688_v46 = vld [vmem:[#allocation2 + $0x30] sm:$0xff] }
 0x141   :  { %v693_v33 = vld [vmem:[#allocation2 + $0x2c] sm:$0xff] }
 0x142   :  { %v698_v47 = vmul.f32 %v693_v33, %v688_v46  ;;  %702 = vst.msk [vmem:[#allocation2 + $0x28] sm:$0xff] %vm636_vm0, %v697_v31  ;;  %v689_v25 = vld [vmem:[#allocation2 + $0x38] sm:$0xff]  ;;  %v690_v49 = vld [vmem:[#allocation2 + $0x40] sm:$0xff] }
 0x143   :  { %v694_v57 = vld [vmem:[#allocation2 + $0x34] sm:$0xff]  ;;  %v695_v24 = vld [vmem:[#allocation2 + $0x3c] sm:$0xff] }
 0x144   :  { %v699_v60 = vmul.f32 %v694_v57, %v689_v25  ;;  %703 = vst.msk [vmem:[#allocation2 + $0x30] sm:$0xff] %vm636_vm0, %v698_v47  ;;  %v700_v58 = vmul.f32 %v695_v24, %v690_v49  ;;  %v781_v31 = vld [vmem:[%s1682_s3] sm:$0x7] }
 0x146   :  { %704 = vst.msk [vmem:[#allocation2 + $0x38] sm:$0xff] %vm636_vm0, %v699_v60  ;;  %705 = vst.msk [vmem:[#allocation2 + $0x40] sm:$0xff] %vm636_vm0, %v700_v58 }
 0x147   :  { %v706_v18 = vld [vmem:[#allocation2 + $0x20] sm:$0xff] }
 0x148   :  { %v712_v62 = vmul.f32 %v711_v30, %v706_v18 }
 0x149   :  { %v707_v9 = vld [vmem:[#allocation2 + $0x28] sm:$0xff] }
 0x14a   :  { %v713_v21 = vmul.f32 %v707_v9, %v706_v18  ;;  %717 = vst.msk [vmem:[#allocation2 + $0x20] sm:$0xff] %vm636_vm0, %v712_v62 }
 0x14b   :  { %v708_v4 = vld [vmem:[#allocation2 + $0x30] sm:$0xff] }
 0x14c   :  { %v714_v5 = vmul.f32 %v708_v4, %v707_v9  ;;  %718 = vst.msk [vmem:[#allocation2 + $0x28] sm:$0xff] %vm636_vm0, %v713_v21 }
 0x14d   :  { %v709_v11 = vld [vmem:[#allocation2 + $0x38] sm:$0xff]  ;;  %v710_v13 = vld [vmem:[#allocation2 + $0x40] sm:$0xff] }
 0x14e   :  { %v715_v55 = vmul.f32 %v709_v11, %v708_v4  ;;  %719 = vst.msk [vmem:[#allocation2 + $0x30] sm:$0xff] %vm636_vm0, %v714_v5  ;;  %v716_v0 = vmul.f32 %v710_v13, %v709_v11 }
 0x150   :  { %720 = vst.msk [vmem:[#allocation2 + $0x38] sm:$0xff] %vm636_vm0, %v715_v55  ;;  %721 = vst.msk [vmem:[#allocation2 + $0x40] sm:$0xff] %vm636_vm0, %v716_v0 }
 0x151   :  { %v722_v50 = vld [vmem:[#allocation2 + $0x20] sm:$0xff] }
 0x152   :  { %v729_v56 = vmul.f32 %v727_v2, %v722_v50 }
 0x153   :  { %v723_v22 = vld [vmem:[#allocation2 + $0x28] sm:$0xff] }
 0x154   :  { %v730_v44 = vmul.f32 %v723_v22, %v711_v30  ;;  %734 = vst.msk [vmem:[#allocation2 + $0x20] sm:$0xff] %vm636_vm0, %v729_v56 }
 0x155   :  { %v724_v8 = vld [vmem:[#allocation2 + $0x30] sm:$0xff] }
 0x156   :  { %v731_v61 = vmul.f32 %v724_v8, %v722_v50  ;;  %735 = vst.msk [vmem:[#allocation2 + $0x28] sm:$0xff] %vm636_vm0, %v730_v44 }
 0x157   :  { %v725_v51 = vld [vmem:[#allocation2 + $0x38] sm:$0xff]  ;;  %v726_v38 = vld [vmem:[#allocation2 + $0x40] sm:$0xff] }
 0x158   :  { %736 = vst.msk [vmem:[#allocation2 + $0x30] sm:$0xff] %vm636_vm0, %v731_v61  ;;  %v732_v63 = vmul.f32 %v725_v51, %v723_v22  ;;  %v733_v20 = vmul.f32 %v726_v38, %v724_v8 }
 0x15a   :  { %737 = vst.msk [vmem:[#allocation2 + $0x38] sm:$0xff] %vm636_vm0, %v732_v63  ;;  %738 = vst.msk [vmem:[#allocation2 + $0x40] sm:$0xff] %vm636_vm0, %v733_v20 }
 0x15b   :  { %v739_v42 = vld [vmem:[#allocation2 + $0x20] sm:$0xff] }
 0x15c   :  { %v748_v28 = vmul.f32 %v744_v32, %v739_v42 }
 0x15d   :  { %v740_v41 = vld [vmem:[#allocation2 + $0x28] sm:$0xff] }
 0x15e   :  { %v749_v35 = vmul.f32 %v745_v59, %v740_v41  ;;  %753 = vst.msk [vmem:[#allocation2 + $0x20] sm:$0xff] %vm636_vm0, %v748_v28 }
 0x15f   :  { %v741_v48 = vld [vmem:[#allocation2 + $0x30] sm:$0xff] }
 0x160   :  { %754 = vst.msk [vmem:[#allocation2 + $0x28] sm:$0xff] %vm636_vm0, %v749_v35  ;;  %v750_v37 = vmul.f32 %v741_v48, %v727_v2 }
 0x161   :  { %v742_v26 = vld [vmem:[#allocation2 + $0x38] sm:$0xff]  ;;  %v743_v3 = vld [vmem:[#allocation2 + $0x40] sm:$0xff] }
 0x162   :  { %v751_v34 = vmul.f32 %v742_v26, %v711_v30  ;;  %755 = vst.msk [vmem:[#allocation2 + $0x30] sm:$0xff] %vm636_vm0, %v750_v37  ;;  %v752_v1 = vmul.f32 %v743_v3, %v739_v42 }
 0x164   :  { %756 = vst.msk [vmem:[#allocation2 + $0x38] sm:$0xff] %vm636_vm0, %v751_v34  ;;  %757 = vst.msk [vmem:[#allocation2 + $0x40] sm:$0xff] %vm636_vm0, %v752_v1  ;;  %vm788_vm0 = vcmask 326656  }
 0x165   :  { %v758_v39 = vld [vmem:[#allocation2 + $0x20] sm:$0xff] }
 0x166   :  { %v767_v40 = vmul.f32 %v766_v15, %v758_v39 }
 0x167   :  { %v759_v36 = vld [vmem:[#allocation2 + $0x28] sm:$0xff] }
 0x168   :  { %v768_v6 = vmul.f32 %v766_v15, %v759_v36 }
 0x169   :  { %v760_v7 = vld [vmem:[#allocation2 + $0x30] sm:$0xff] }
 0x16a   :  { %v769_v29 = vmul.f32 %v766_v15, %v760_v7 }
 0x16b   :  { %v762_v45 = vld [vmem:[#allocation2 + $0x40] sm:$0xff]  ;;  %v761_v12 = vld [vmem:[#allocation2 + $0x38] sm:$0xff] }
 0x16c   :  { %v775_v16 = vrot.slane %v762_v45, %v774_v27  ;;  %v770_v17 = vmul.f32 %v766_v15, %v761_v12  ;;  %v771_v54 = vmul.f32 %v766_v15, %v762_v45 }
 0x16e   :  { %v776_v43 = vsel %vm616_vm7, %v775_v16, %v767_v40  ;;  %v949_v19 = vpack.c.bf16 %v770_v17, %v769_v29  ;;  %vm899_vm7 = vcmask 10240  }
 0x16f   :  { %v946_v23 = vpack.c.bf16 %v768_v6, %v776_v43 }
 0x171   :  { %947 = vmatpush3.bf16.msra.mxu0 %v946_v23 }
 0x172   :  { %948 = vmatprep.subr.bf16.mxu0 %v1020_v52 }
 0x175   :  { %950 = vmatpush3.bf16.msra.mxu0 %v949_v19 }
 0x176   :  { %940 = vmatprep.subr.mxu0 %v1022_v14 }
 0x179   :  { %941 = vmatpush3.msra.mxu0 %v771_v54 }
 0x17a   :  { %943 = vmatmul.mubr.msk.f32.vlgmr.msra.gmra.mrb[0].mxu0 %vm788_vm0, %v781_v31 }
 0x24d   :  { %v858_v46 = vpop.f32.mrb[0].mxu0 }
 0x24e   :  { %v859_v33 = vadd.f32 %v858_v46, %v786_v53  ;;  %v944_v47 = vpop.f32.mrb[1].mxu0 }
 0x250   :  { %v863_v25 = vrot.slane %v859_v33, 1  ;;  %v866_v49 = vrot.slane %v859_v33, 2 }
 0x252   :  { %v865_v57 = vmax.f32 %v859_v33, %v863_v25 }
 0x254   :  { %v868_v52 = vmax.f32 %v865_v57, %v866_v49 }
 0x256   :  { %v869_v24 = vsub.f32 %v859_v33, %v868_v52  ;;  %v873_v60 = vrot.slane %v868_v52, 7  ;;  %v882_v58 = vrot.slane %v868_v52, 6 }
 0x258   :  { %v875_v14 = vsub.f32 %v859_v33, %v873_v60  ;;  %v884_v30 = vsub.f32 %v859_v33, %v882_v58  ;;  %v870_v18 = vmul.f32 1.442695, %v869_v24 }
 0x25a   :  { %v876_v62 = vmul.f32 1.442695, %v875_v14  ;;  %v885_v9 = vmul.f32 1.442695, %v884_v30 }
 0x25c   :  { %1004 = vpow2.f32 %v876_v62 }
 0x25d   :  { %1006 = vpow2.f32 %v885_v9 }
 0x25e   :  { %1008 = vpow2.f32 %v870_v18 }
 0x266   :  { %v1005_v21 = vpop.eup %1004 }
 0x267   :  { %v1007_v4 = vpop.eup %1006  ;;  %v879_v5 = vrot.slane %v1005_v21, 1 }
 0x268   :  { %v1009_v11 = vpop.eup %1008  ;;  %v888_v55 = vrot.slane %v1007_v4, 2 }
 0x269   :  { %v881_v13 = vadd.f32 %v1009_v11, %v879_v5 }
 0x26b   :  { %v890_v0 = vadd.f32 %v888_v55, %v881_v13 }
 0x26d   :  { %1010 = vlog2.f32 %v890_v0 }
 0x277   :  { %v1011_v2 = vpop.eup %1010 }
 0x278   :  { %v892_v50 = vmul.f32 0.6931472, %v1011_v2 }
 0x27a   :  { %v893_v56 = vadd.f32 %v892_v50, %v868_v52 }
 0x27c   :  { %v897_v22 = vrot.slane %v893_v56, %v765_v10 }
 0x27e   :  { %v898_v44 = vsub.f32 %v859_v33, %v897_v22 }
 0x280   :  { %900 = vst.msk [vmem:[%s1683_s5] sm:$0x7] %vm899_vm7, %v898_v44 }

</bundles_post_ra>
